<compile_context>
chip_gen: v6e
topology: v6e:2x2x1
jax: 0.10.0
libtpu: 0.0.40
codegen_flags: <defaults>
</compile_context>

<pallas_src>
import jax
import jax.numpy as jnp
from jax import lax
from jax.experimental import pallas as pl
from jax.experimental.pallas import tpu as pltpu

BN_EPS = 1e-5
LANE = 128
SUBLANE = 8


def _round_up(n, m):
    return ((n + m - 1) // m) * m


def _pad2d(a, rows, cols):
    r, c = a.shape
    if r == rows and c == cols:
        return a
    return jnp.pad(a, ((0, rows - r), (0, cols - c)))


# ------------------------------------------------------------------
# Single fused kernel for the whole MLP forward
# ------------------------------------------------------------------
def make_fused_kernel(n_hidden):
    """Ref order:
       inputs : x, (Wt_i, b_i, gamma_i, beta_i) * n_hidden, Wt_f, b_f   (all VMEM, lane-padded)
       outputs: post_lin_0..post_lin_{n-1}, h_0..h_{n-1}, y
    """
    n_in = 1 + 4 * n_hidden + 2

    def kernel(*refs):
        in_refs = refs[:n_in]
        out_refs = refs[n_in:]

        h = in_refs[0][...]                                  # [B, Dpad_in]
        inv_b = jnp.float32(1.0 / h.shape[0])

        for i in range(n_hidden):                            # unrolled at trace time
            w_ref, b_ref, g_ref, beta_ref = in_refs[1 + 4 * i: 1 + 4 * (i + 1)]

            post = jnp.dot(h, w_ref[...],
                           preferred_element_type=jnp.float32) + b_ref[...]
            out_refs[i][...] = post                          # post_lins[i]

            pre = jnp.maximum(post, 0.0)                     # ReLU (pre_bns recomputed in wrapper)

            # Single-pass BatchNorm1d training statistics (per-feature, biased variance)
            s1 = jnp.sum(pre, axis=0, keepdims=True) * inv_b           # E[x]
            s2 = jnp.sum(pre * pre, axis=0, keepdims=True) * inv_b     # E[x^2]
            var = jnp.maximum(s2 - s1 * s1, 0.0)
            inv_std = lax.rsqrt(var + BN_EPS)

            h = g_ref[...] * (pre - s1) * inv_std + beta_ref[...]
            out_refs[n_hidden + i][...] = h                  # hs[i]

        wf_ref = in_refs[1 + 4 * n_hidden]
        bf_ref = in_refs[2 + 4 * n_hidden]
        out_refs[2 * n_hidden][...] = (
            jnp.dot(h, wf_ref[...], preferred_element_type=jnp.float32) + bf_ref[...])

    return kernel


# ------------------------------------------------------------------
# Parameter init (mimics nn.Linear / BatchNorm1d defaults) and one-time prep
# ------------------------------------------------------------------
def init_params(key, d, ks, d_output, multi=1):
    params = {"hidden": [], "final": None}
    last_k = d
    for k in ks:
        k = k * multi
        key, kw, kb = jax.random.split(key, 3)
        bound = 1.0 / jnp.sqrt(last_k)
        W = jax.random.uniform(kw, (k, last_k), jnp.float32, -bound, bound)
        b = jax.random.uniform(kb, (k,), jnp.float32, -bound, bound)
        gamma = jnp.ones((k,), jnp.float32)
        beta = jnp.zeros((k,), jnp.float32)
        params["hidden"].append((W, b, gamma, beta))
        last_k = k
    key, kw, kb = jax.random.split(key, 3)
    bound = 1.0 / jnp.sqrt(last_k)
    Wf = jax.random.uniform(kw, (d_output, last_k), jnp.float32, -bound, bound)
    bf = jax.random.uniform(kb, (d_output,), jnp.float32, -bound, bound)
    params["final"] = (Wf, bf)
    return params


def prepare_params(params):
    """One-time: transpose weights to [Din, Dout], reshape vectors to [1, D],
    zero-pad feature dims to a multiple of 128 (lane-dense kernel I/O)."""
    hidden = params["hidden"]
    Wf, bf = params["final"]

    true_dims = [W.shape[0] for (W, _, _, _) in hidden] + [Wf.shape[0]]
    d_in = hidden[0][0].shape[1] if hidden else Wf.shape[1]
    pad_in = _round_up(d_in, LANE)
    pad_dims = [_round_up(k, LANE) for k in true_dims]

    tensors = []
    last_pad = pad_in
    for (W, b, gamma, beta), dp in zip(hidden, pad_dims[:-1]):
        tensors.append(_pad2d(W.T.astype(jnp.float32), last_pad, dp))
        tensors.append(_pad2d(b.reshape(1, -1).astype(jnp.float32), 1, dp))
        tensors.append(_pad2d(gamma.reshape(1, -1).astype(jnp.float32), 1, dp))
        tensors.append(_pad2d(beta.reshape(1, -1).astype(jnp.float32), 1, dp))
        last_pad = dp
    tensors.append(_pad2d(Wf.T.astype(jnp.float32), last_pad, pad_dims[-1]))
    tensors.append(_pad2d(bf.reshape(1, -1).astype(jnp.float32), 1, pad_dims[-1]))

    return dict(tensors=tuple(jax.device_put(t) for t in tensors),
                true_dims=tuple(true_dims),
                pad_dims=tuple(pad_dims),
                d_in=d_in, pad_in=pad_in,
                n_hidden=len(hidden))


# ------------------------------------------------------------------
# Forward wrapper (single pallas_call)
# ------------------------------------------------------------------
def make_forward(prep):
    n_hidden = prep["n_hidden"]
    true_dims = prep["true_dims"]
    pad_dims = prep["pad_dims"]
    pad_in = prep["pad_in"]
    kernel = make_fused_kernel(n_hidden)
    n_in = 1 + 4 * n_hidden + 2
    vmem = pl.BlockSpec(memory_space=pltpu.MemorySpace.VMEM)

    @jax.jit
    def fwd(x, *tensors):
        B, _ = x.shape
        assert B % SUBLANE == 0, "batch must be a multiple of 8 (BN stats over full batch)"
        x_pad = _pad2d(x.astype(jnp.float32), B, pad_in)

        out_shape = (
            tuple(jax.ShapeDtypeStruct((B, pad_dims[i]), jnp.float32) for i in range(n_hidden))
            + tuple(jax.ShapeDtypeStruct((B, pad_dims[i]), jnp.float32) for i in range(n_hidden))
            + (jax.ShapeDtypeStruct((B, pad_dims[-1]), jnp.float32),))

        outs = pl.pallas_call(
            kernel,
            out_shape=out_shape,
            in_specs=[vmem] * n_in,
            out_specs=tuple(vmem for _ in range(2 * n_hidden + 1)),
        )(x_pad, *tensors)

        post_pad = outs[:n_hidden]
        h_pad = outs[n_hidden:2 * n_hidden]
        y_pad = outs[2 * n_hidden]

        post_lins = [post_pad[i][:, :true_dims[i]] for i in range(n_hidden)]
        hs = [h_pad[i][:, :true_dims[i]] for i in range(n_hidden)]
        # bn_before_relu=False  =>  pre_bns[i] == relu(post_lins[i]); recomputed (free) in wrapper.
        pre_bns = [jnp.maximum(p, 0.0) for p in post_lins]
        y = y_pad[:, :true_dims[-1]]
        return dict(hs=hs, post_lins=post_lins, pre_bns=pre_bns, y=y)

    return fwd


# ------------------------------------------------------------------
# Pure-JAX reference for sanity checking
# ------------------------------------------------------------------
def model_forward_ref(x, params):
    hs, post_lins, pre_bns = [], [], []
    h = x
    for (W, b, gamma, beta) in params["hidden"]:
        post = h @ W.T + b
        post_lins.append(post)
        pre = jnp.maximum(post, 0.0)
        pre_bns.append(pre)
        mean = jnp.mean(pre, axis=0, keepdims=True)
        var = jnp.mean((pre - mean) ** 2, axis=0, keepdims=True)
        h = gamma * (pre - mean) * lax.rsqrt(var + BN_EPS) + beta
        hs.append(h)
    Wf, bf = params["final"]
    y = hs[-1] @ Wf.T + bf
    return dict(hs=hs, post_lins=post_lins, pre_bns=pre_bns, y=y)


if __name__ == "__main__":
    # Small shapes consistent with the MLP forward: x is [batch, d].
    B, d, ks, d_output = 8, 32, [32, 64], 16

    key = jax.random.PRNGKey(0)
    key, kx, kp = jax.random.split(key, 3)
    x = jax.random.normal(kx, (B, d), jnp.float32)
    params = init_params(kp, d, ks, d_output)

    prep = prepare_params(params)          # one-time transpose / reshape / lane padding
    forward = make_forward(prep)

    out = forward(x, *prep["tensors"])
    jax.block_until_ready(out["y"])

    # sanity check against pure-JAX reference
    ref = model_forward_ref(x, params)
    assert jnp.allclose(out["y"], ref["y"], atol=1e-4, rtol=1e-4), "y mismatch vs reference"
    for i in range(len(ks)):
        assert jnp.allclose(out["post_lins"][i], ref["post_lins"][i], atol=1e-4, rtol=1e-4)
        assert jnp.allclose(out["pre_bns"][i], ref["pre_bns"][i], atol=1e-4, rtol=1e-4)
        assert jnp.allclose(out["hs"][i], ref["hs"][i], atol=1e-4, rtol=1e-4)
    assert out["y"].shape == (B, d_output)
    assert len(out["hs"]) == len(ks) and len(out["post_lins"]) == len(ks) and len(out["pre_bns"]) == len(ks)

    print("KERNEL_OK")
</pallas_src>

<mosaic_0001>
module attributes {stable_mosaic.version = 11 : i64} {
  func.func @kernel(%arg0: memref<8x128xf32, #tpu.memory_space<vmem>>, %arg1: memref<128x128xf32, #tpu.memory_space<vmem>>, %arg2: memref<1x128xf32, #tpu.memory_space<vmem>>, %arg3: memref<1x128xf32, #tpu.memory_space<vmem>>, %arg4: memref<1x128xf32, #tpu.memory_space<vmem>>, %arg5: memref<128x128xf32, #tpu.memory_space<vmem>>, %arg6: memref<1x128xf32, #tpu.memory_space<vmem>>, %arg7: memref<1x128xf32, #tpu.memory_space<vmem>>, %arg8: memref<1x128xf32, #tpu.memory_space<vmem>>, %arg9: memref<128x128xf32, #tpu.memory_space<vmem>>, %arg10: memref<1x128xf32, #tpu.memory_space<vmem>>, %arg11: memref<8x128xf32, #tpu.memory_space<vmem>>, %arg12: memref<8x128xf32, #tpu.memory_space<vmem>>, %arg13: memref<8x128xf32, #tpu.memory_space<vmem>>, %arg14: memref<8x128xf32, #tpu.memory_space<vmem>>, %arg15: memref<8x128xf32, #tpu.memory_space<vmem>>) attributes {dimension_semantics = [], scalar_prefetch = 0 : i64, scratch_operands = 0 : i64, tpu.core_type = #tpu.core_type<tc>} {
    %c0 = arith.constant 0 : index
    %c0_0 = arith.constant 0 : index
    %0 = vector.load %arg0[%c0, %c0_0] : memref<8x128xf32, #tpu.memory_space<vmem>>, vector<8x128xf32>
    %c0_1 = arith.constant 0 : index
    %c0_2 = arith.constant 0 : index
    %1 = vector.load %arg1[%c0_1, %c0_2] : memref<128x128xf32, #tpu.memory_space<vmem>>, vector<128x128xf32>
    %cst = arith.constant dense<0.000000e+00> : vector<8x128xf32>
    %2 = tpu.matmul %0, %1, %cst {dimension_numbers = #tpu.dot_dimension_numbers<[1], [0], [0], [1], [0, 0, 1, 1], [], []>} : vector<8x128xf32>, vector<128x128xf32>, vector<8x128xf32> -> vector<8x128xf32>
    %c0_3 = arith.constant 0 : index
    %c0_4 = arith.constant 0 : index
    %3 = vector.load %arg2[%c0_3, %c0_4] : memref<1x128xf32, #tpu.memory_space<vmem>>, vector<1x128xf32>
    %4 = vector.broadcast %3 : vector<1x128xf32> to vector<8x128xf32>
    %5 = arith.addf %2, %4 : vector<8x128xf32>
    %c0_5 = arith.constant 0 : index
    %c0_6 = arith.constant 0 : index
    %6 = vector.load %arg11[%c0_5, %c0_6] : memref<8x128xf32, #tpu.memory_space<vmem>>, vector<8x128xf32>
    tpu.vector_store %arg11[%c0_5, %c0_6], %5 {strides = array<i32>} : memref<8x128xf32, #tpu.memory_space<vmem>>, vector<8x128xf32>,
    %cst_7 = arith.constant 0.000000e+00 : f32
    %7 = vector.broadcast %cst_7 : f32 to vector<8x128xf32>
    %8 = arith.maximumf %5, %7 : vector<8x128xf32>
    %cst_8 = arith.constant dense<0.000000e+00> : vector<128xf32>
    %9 = vector.multi_reduction <add>, %8, %cst_8 [0] : vector<8x128xf32> to vector<128xf32>
    %10 = vector.shape_cast %9 : vector<128xf32> to vector<1x128xf32>
    %cst_9 = arith.constant 1.250000e-01 : f32
    %11 = vector.broadcast %cst_9 : f32 to vector<1x128xf32>
    %12 = arith.mulf %10, %11 : vector<1x128xf32>
    %13 = arith.mulf %8, %8 : vector<8x128xf32>
    %cst_10 = arith.constant dense<0.000000e+00> : vector<128xf32>
    %14 = vector.multi_reduction <add>, %13, %cst_10 [0] : vector<8x128xf32> to vector<128xf32>
    %15 = vector.shape_cast %14 : vector<128xf32> to vector<1x128xf32>
    %cst_11 = arith.constant 1.250000e-01 : f32
    %16 = vector.broadcast %cst_11 : f32 to vector<1x128xf32>
    %17 = arith.mulf %15, %16 : vector<1x128xf32>
    %18 = arith.mulf %12, %12 : vector<1x128xf32>
    %19 = arith.subf %17, %18 : vector<1x128xf32>
    %cst_12 = arith.constant 0.000000e+00 : f32
    %20 = vector.broadcast %cst_12 : f32 to vector<1x128xf32>
    %21 = arith.maximumf %19, %20 : vector<1x128xf32>
    %cst_13 = arith.constant 9.99999974E-6 : f32
    %22 = vector.broadcast %cst_13 : f32 to vector<1x128xf32>
    %23 = arith.addf %21, %22 : vector<1x128xf32>
    %24 = math.rsqrt %23 : vector<1x128xf32>
    %c0_14 = arith.constant 0 : index
    %c0_15 = arith.constant 0 : index
    %25 = vector.load %arg3[%c0_14, %c0_15] : memref<1x128xf32, #tpu.memory_space<vmem>>, vector<1x128xf32>
    %26 = vector.broadcast %12 : vector<1x128xf32> to vector<8x128xf32>
    %27 = arith.subf %8, %26 : vector<8x128xf32>
    %28 = vector.broadcast %25 : vector<1x128xf32> to vector<8x128xf32>
    %29 = arith.mulf %28, %27 : vector<8x128xf32>
    %30 = vector.broadcast %24 : vector<1x128xf32> to vector<8x128xf32>
    %31 = arith.mulf %29, %30 : vector<8x128xf32>
    %c0_16 = arith.constant 0 : index
    %c0_17 = arith.constant 0 : index
    %32 = vector.load %arg4[%c0_16, %c0_17] : memref<1x128xf32, #tpu.memory_space<vmem>>, vector<1x128xf32>
    %33 = vector.broadcast %32 : vector<1x128xf32> to vector<8x128xf32>
    %34 = arith.addf %31, %33 : vector<8x128xf32>
    %c0_18 = arith.constant 0 : index
    %c0_19 = arith.constant 0 : index
    %35 = vector.load %arg13[%c0_18, %c0_19] : memref<8x128xf32, #tpu.memory_space<vmem>>, vector<8x128xf32>
    tpu.vector_store %arg13[%c0_18, %c0_19], %34 {strides = array<i32>} : memref<8x128xf32, #tpu.memory_space<vmem>>, vector<8x128xf32>,
    %c0_20 = arith.constant 0 : index
    %c0_21 = arith.constant 0 : index
    %36 = vector.load %arg5[%c0_20, %c0_21] : memref<128x128xf32, #tpu.memory_space<vmem>>, vector<128x128xf32>
    %cst_22 = arith.constant dense<0.000000e+00> : vector<8x128xf32>
    %37 = tpu.matmul %34, %36, %cst_22 {dimension_numbers = #tpu.dot_dimension_numbers<[1], [0], [0], [1], [0, 0, 1, 1], [], []>} : vector<8x128xf32>, vector<128x128xf32>, vector<8x128xf32> -> vector<8x128xf32>
    %c0_23 = arith.constant 0 : index
    %c0_24 = arith.constant 0 : index
    %38 = vector.load %arg6[%c0_23, %c0_24] : memref<1x128xf32, #tpu.memory_space<vmem>>, vector<1x128xf32>
    %39 = vector.broadcast %38 : vector<1x128xf32> to vector<8x128xf32>
    %40 = arith.addf %37, %39 : vector<8x128xf32>
    %c0_25 = arith.constant 0 : index
    %c0_26 = arith.constant 0 : index
    %41 = vector.load %arg12[%c0_25, %c0_26] : memref<8x128xf32, #tpu.memory_space<vmem>>, vector<8x128xf32>
    tpu.vector_store %arg12[%c0_25, %c0_26], %40 {strides = array<i32>} : memref<8x128xf32, #tpu.memory_space<vmem>>, vector<8x128xf32>,
    %cst_27 = arith.constant 0.000000e+00 : f32
    %42 = vector.broadcast %cst_27 : f32 to vector<8x128xf32>
    %43 = arith.maximumf %40, %42 : vector<8x128xf32>
    %cst_28 = arith.constant dense<0.000000e+00> : vector<128xf32>
    %44 = vector.multi_reduction <add>, %43, %cst_28 [0] : vector<8x128xf32> to vector<128xf32>
    %45 = vector.shape_cast %44 : vector<128xf32> to vector<1x128xf32>
    %cst_29 = arith.constant 1.250000e-01 : f32
    %46 = vector.broadcast %cst_29 : f32 to vector<1x128xf32>
    %47 = arith.mulf %45, %46 : vector<1x128xf32>
    %48 = arith.mulf %43, %43 : vector<8x128xf32>
    %cst_30 = arith.constant dense<0.000000e+00> : vector<128xf32>
    %49 = vector.multi_reduction <add>, %48, %cst_30 [0] : vector<8x128xf32> to vector<128xf32>
    %50 = vector.shape_cast %49 : vector<128xf32> to vector<1x128xf32>
    %cst_31 = arith.constant 1.250000e-01 : f32
    %51 = vector.broadcast %cst_31 : f32 to vector<1x128xf32>
    %52 = arith.mulf %50, %51 : vector<1x128xf32>
    %53 = arith.mulf %47, %47 : vector<1x128xf32>
    %54 = arith.subf %52, %53 : vector<1x128xf32>
    %cst_32 = arith.constant 0.000000e+00 : f32
    %55 = vector.broadcast %cst_32 : f32 to vector<1x128xf32>
    %56 = arith.maximumf %54, %55 : vector<1x128xf32>
    %cst_33 = arith.constant 9.99999974E-6 : f32
    %57 = vector.broadcast %cst_33 : f32 to vector<1x128xf32>
    %58 = arith.addf %56, %57 : vector<1x128xf32>
    %59 = math.rsqrt %58 : vector<1x128xf32>
    %c0_34 = arith.constant 0 : index
    %c0_35 = arith.constant 0 : index
    %60 = vector.load %arg7[%c0_34, %c0_35] : memref<1x128xf32, #tpu.memory_space<vmem>>, vector<1x128xf32>
    %61 = vector.broadcast %47 : vector<1x128xf32> to vector<8x128xf32>
    %62 = arith.subf %43, %61 : vector<8x128xf32>
    %63 = vector.broadcast %60 : vector<1x128xf32> to vector<8x128xf32>
    %64 = arith.mulf %63, %62 : vector<8x128xf32>
    %65 = vector.broadcast %59 : vector<1x128xf32> to vector<8x128xf32>
    %66 = arith.mulf %64, %65 : vector<8x128xf32>
    %c0_36 = arith.constant 0 : index
    %c0_37 = arith.constant 0 : index
    %67 = vector.load %arg8[%c0_36, %c0_37] : memref<1x128xf32, #tpu.memory_space<vmem>>, vector<1x128xf32>
    %68 = vector.broadcast %67 : vector<1x128xf32> to vector<8x128xf32>
    %69 = arith.addf %66, %68 : vector<8x128xf32>
    %c0_38 = arith.constant 0 : index
    %c0_39 = arith.constant 0 : index
    %70 = vector.load %arg14[%c0_38, %c0_39] : memref<8x128xf32, #tpu.memory_space<vmem>>, vector<8x128xf32>
    tpu.vector_store %arg14[%c0_38, %c0_39], %69 {strides = array<i32>} : memref<8x128xf32, #tpu.memory_space<vmem>>, vector<8x128xf32>,
    %c0_40 = arith.constant 0 : index
    %c0_41 = arith.constant 0 : index
    %71 = vector.load %arg9[%c0_40, %c0_41] : memref<128x128xf32, #tpu.memory_space<vmem>>, vector<128x128xf32>
    %cst_42 = arith.constant dense<0.000000e+00> : vector<8x128xf32>
    %72 = tpu.matmul %69, %71, %cst_42 {dimension_numbers = #tpu.dot_dimension_numbers<[1], [0], [0], [1], [0, 0, 1, 1], [], []>} : vector<8x128xf32>, vector<128x128xf32>, vector<8x128xf32> -> vector<8x128xf32>
    %c0_43 = arith.constant 0 : index
    %c0_44 = arith.constant 0 : index
    %73 = vector.load %arg10[%c0_43, %c0_44] : memref<1x128xf32, #tpu.memory_space<vmem>>, vector<1x128xf32>
    %74 = vector.broadcast %73 : vector<1x128xf32> to vector<8x128xf32>
    %75 = arith.addf %72, %74 : vector<8x128xf32>
    %c0_45 = arith.constant 0 : index
    %c0_46 = arith.constant 0 : index
    %76 = vector.load %arg15[%c0_45, %c0_46] : memref<8x128xf32, #tpu.memory_space<vmem>>, vector<8x128xf32>
    tpu.vector_store %arg15[%c0_45, %c0_46], %75 {strides = array<i32>} : memref<8x128xf32, #tpu.memory_space<vmem>>, vector<8x128xf32>,
    return
  }
}

</mosaic_0001>

<bundles_post_ra>
// kernel: fwd.1
= control target key start
LH: loop header
LB: loop body
LE: loop exit
PB: predicated region body
PF: predicated region fallthrough
CT: control target
= control target key end

     0   :  { %21 = vsyncpa [#allocation3], 0  ;;  %s997_s0 = inlined_call_operand.vmem [shape: f32[8,128], index: 0, kind: input, shape index: {}]   ;;  %s998_s1 = inlined_call_operand.hbm [shape: f32[128,128], index: 1, kind: input, shape index: {}]   ;;  %s999_s2 = inlined_call_operand.vmem [shape: f32[1,128], index: 2, kind: input, shape index: {}]   ;;  %s1000_s3 = inlined_call_operand.vmem [shape: f32[1,128], index: 3, kind: input, shape index: {}]   ;;  %s1001_s4 = inlined_call_operand.vmem [shape: f32[1,128], index: 4, kind: input, shape index: {}]   ;;  %s1002_s5 = inlined_call_operand.hbm [shape: f32[128,128], index: 5, kind: input, shape index: {}]   ;;  %s1003_s6 = inlined_call_operand.vmem [shape: f32[1,128], index: 6, kind: input, shape index: {}]   ;;  %s1004_s7 = inlined_call_operand.vmem [shape: f32[1,128], index: 7, kind: input, shape index: {}]   ;;  %s1005_s8 = inlined_call_operand.vmem [shape: f32[1,128], index: 8, kind: input, shape index: {}]   ;;  %s1006_s9 = inlined_call_operand.hbm [shape: f32[128,128], index: 9, kind: input, shape index: {}]   ;;  %s1007_s10 = inlined_call_operand.vmem [shape: f32[1,128], index: 10, kind: input, shape index: {}]   ;;  %s1008_s11 = inlined_call_operand.vmem [shape: f32[8,128], index: 11, kind: output, shape index: {0}]   ;;  %s1009_s12 = inlined_call_operand.vmem [shape: f32[8,128], index: 12, kind: output, shape index: {1}]   ;;  %s1010_s13 = inlined_call_operand.hbm [shape: f32[8,128], index: 13, kind: output, shape index: {2}]   ;;  %s1011_s14 = inlined_call_operand.hbm [shape: f32[8,128], index: 14, kind: output, shape index: {3}]   ;;  %s1012_s15 = inlined_call_operand.hbm [shape: f32[8,128], index: 15, kind: output, shape index: {4}]  }
   0x1   :  { %22 = vsyncpa [#allocation6], 0 }
   0x2   :  { %23 = vsyncpa [#allocation4], 0 }
   0x3   :  { %24 = vsyncpa [#allocation10], 0  ;;  %s805_s18 = smov [#allocation5]   ;;  %s806_s20 = smov [#allocation2]  }
   0x4   :  { %s50_s19 = sshll.u32 %s805_s18, 4  ;;  %s32_s21 = sshll.u32 %s806_s20, 4  ;;  %s51_s19 = int_to_ptr.vmem [resolvable:$true] %s50_s19  ;;  %s33_s21 = int_to_ptr.vmem [resolvable:$true] %s32_s21 }
   0x5   :  { %s685_s22 = scalar_lea.vmem %s51_s19, 2048  ;;  %p690_p1 = scmp.lt.s32.totalorder %s51_s19, %s51_s19 }
   0x6   :  { %p686_p0 = scmp.ne.s32.totalorder %s51_s19, %s685_s22  ;;  %p691_p2 = scmp.lt.s32.totalorder %s685_s22, %s685_s22 }
   0x8   :  { %p692_p3 = por %p691_p2, %p690_p1 }
   0xa   :  { %p693_p4 = pnand %p692_p3, %p686_p0 }
   0xc   :  { %696 = shalt.err (!%p693_p4)
}
   0xd   :  { %s807_s23 = smov 128   ;;  %s808_s24 = smov 8  }
   0xe   :  { %56 = dma.hbm_to_vmem [thread:$0]  %s1002_s5, 2048, %s51_s19, [#allocation6], %s807_s23, %s807_s23, %s808_s24  }
   0xf   :  { %s705_s27 = scalar_lea.vmem %s33_s21, 2048  ;;  %p710_p6 = scmp.lt.s32.totalorder %s33_s21, %s33_s21 }
  0x10   :  { %p706_p5 = scmp.ne.s32.totalorder %s33_s21, %s705_s27  ;;  %p711_p7 = scmp.lt.s32.totalorder %s705_s27, %s705_s27 }
  0x12   :  { %p712_p8 = por %p711_p7, %p710_p6 }
  0x14   :  { %p713_p9 = pnand %p712_p8, %p706_p5 }
  0x16   :  { %716 = shalt.err (!%p713_p9)
}
  0x17   :  { %38 = dma.hbm_to_vmem [thread:$0]  %s998_s1, 2048, %s33_s21, [#allocation3], %s807_s23, %s807_s23, %s808_s24  }
  0x18   :  { %s809_s30 = smov [#allocation7]  }
  0x19   :  { %s68_s16 = sshll.u32 %s809_s30, 4  ;;  %s69_s16 = int_to_ptr.vmem [resolvable:$true] %s68_s16 }
  0x1a   :  { %s725_s17 = scalar_lea.vmem %s69_s16, 2048  ;;  %p730_p11 = scmp.lt.s32.totalorder %s69_s16, %s69_s16 }
  0x1b   :  { %p726_p10 = scmp.ne.s32.totalorder %s69_s16, %s725_s17  ;;  %p731_p12 = scmp.lt.s32.totalorder %s725_s17, %s725_s17 }
  0x1d   :  { %p732_p13 = por %p731_p12, %p730_p11 }
  0x1f   :  { %p733_p0 = pnand %p732_p13, %p726_p10 }
  0x21   :  { %736 = shalt.err (!%p733_p0)
}
  0x22   :  { %74 = dma.hbm_to_vmem [thread:$0]  %s1006_s9, 2048, %s69_s16, [#allocation6], %s807_s23, %s807_s23, %s808_s24  }
  0x23   :  { %797 = dma.done.wait [#allocation3], 2048  }
  0x24   :  { %798 = vsyncadd [#allocation3], 4294965248 }
  0x25   :  { %799 = dma.done.wait [#allocation6], 4096  }
  0x26   :  { %800 = vsyncadd [#allocation6], 4294963200  ;;  %v810_v0 = vmov 0.0   ;;  %vm811_vm0 = vmmov 0   ;;  %v102_v1 = vld [vmem:[#allocation2 + $0x78] sm:$0xff]  ;;  %v101_v2 = vld [vmem:[#allocation2 + $0x70] sm:$0xff] }
  0x27   :  { %558 = vmatprep.subr.mxu0 %v810_v0  ;;  %590 = vmatprep.mubr.msk.f32.mxu0 %vm811_vm0, %v810_v0  ;;  %v100_v3 = vld [vmem:[#allocation2 + $0x68] sm:$0xff]  ;;  %v99_v4 = vld [vmem:[#allocation2 + $0x60] sm:$0xff]  ;;  %v98_v5 = vld [vmem:[#allocation2 + $0x58] sm:$0xff]  ;;  %s812_s28 = smov [#allocation9]   ;;  %s813_s30 = smov [#allocation8]  }
  0x28   :  { %593 = vmatprep.subr.mxu1 %v810_v0  ;;  %625 = vmatprep.mubr.msk.f32.mxu1 %vm811_vm0, %v810_v0  ;;  %v97_v6 = vld [vmem:[#allocation2 + $0x50] sm:$0xff]  ;;  %v96_v7 = vld [vmem:[#allocation2 + $0x48] sm:$0xff]  ;;  %v95_v8 = vld [vmem:[#allocation2 + $0x40] sm:$0xff]  ;;  %s469_s29 = sshll.u32 %s812_s28, 4  ;;  %s459_s16 = sshll.u32 %s813_s30, 4  ;;  %s470_s29 = int_to_ptr.vmem [resolvable:$true] %s469_s29  ;;  %s460_s16 = int_to_ptr.vmem [resolvable:$true] %s459_s16 }
  0x29   :  { %559 = vmatpush3.msra.mxu0 %v102_v1  ;;  %v94_v9 = vld [vmem:[#allocation2 + $0x38] sm:$0xff]  ;;  %v93_v10 = vld [vmem:[#allocation2 + $0x30] sm:$0xff]  ;;  %v92_v11 = vld [vmem:[#allocation2 + $0x28] sm:$0xff]  ;;  %s737_s17 = scalar_lea.vmem %s470_s29, 128  ;;  %p742_p2 = scmp.lt.s32.totalorder %s470_s29, %s470_s29 }
  0x2a   :  { %560 = vmatprep.subr.mxu0 %v810_v0  ;;  %v91_v12 = vld [vmem:[#allocation2 + $0x20] sm:$0xff]  ;;  %v90_v13 = vld [vmem:[#allocation2 + $0x18] sm:$0xff]  ;;  %v89_v14 = vld [vmem:[#allocation2 + $0x10] sm:$0xff]  ;;  %p738_p1 = scmp.ne.s32.totalorder %s470_s29, %s737_s17  ;;  %p743_p3 = scmp.lt.s32.totalorder %s737_s17, %s737_s17 }
  0x2b   :  { %561 = vmatpush3.msra.mxu0 %v101_v2  ;;  %v88_v15 = vld [vmem:[#allocation2 + $0x8] sm:$0xff]  ;;  %v87_v16 = vld [vmem:[#allocation2] sm:$0xff]  ;;  %v236_v18 = vld [vmem:[#allocation5 + $0x78] sm:$0xff] }
  0x2c   :  { %562 = vmatprep.subr.mxu0 %v810_v0  ;;  %v86_v17 = vld [vmem:[%s997_s0] sm:$0xff]  ;;  %594 = vmatpush3.msra.mxu1 %v236_v18  ;;  %v235_v19 = vld [vmem:[#allocation5 + $0x70] sm:$0xff]  ;;  %v234_v20 = vld [vmem:[#allocation5 + $0x68] sm:$0xff]  ;;  %p744_p4 = por %p743_p3, %p742_p2 }
  0x2d   :  { %563 = vmatpush3.msra.mxu0 %v100_v3  ;;  %595 = vmatprep.subr.mxu1 %v810_v0  ;;  %v233_v21 = vld [vmem:[#allocation5 + $0x60] sm:$0xff]  ;;  %v232_v22 = vld [vmem:[#allocation5 + $0x58] sm:$0xff]  ;;  %v231_v23 = vld [vmem:[#allocation5 + $0x50] sm:$0xff] }
  0x2e   :  { %564 = vmatprep.subr.mxu0 %v810_v0  ;;  %596 = vmatpush3.msra.mxu1 %v235_v19  ;;  %v230_v24 = vld [vmem:[#allocation5 + $0x48] sm:$0xff]  ;;  %v229_v25 = vld [vmem:[#allocation5 + $0x40] sm:$0xff]  ;;  %v228_v26 = vld [vmem:[#allocation5 + $0x38] sm:$0xff]  ;;  %p745_p5 = pnand %p744_p4, %p738_p1 }
  0x2f   :  { %565 = vmatpush3.msra.mxu0 %v99_v4  ;;  %597 = vmatprep.subr.mxu1 %v810_v0  ;;  %v227_v27 = vld [vmem:[#allocation5 + $0x30] sm:$0xff]  ;;  %v226_v28 = vld [vmem:[#allocation5 + $0x28] sm:$0xff]  ;;  %v225_v29 = vld [vmem:[#allocation5 + $0x20] sm:$0xff] }
  0x30   :  { %566 = vmatprep.subr.mxu0 %v810_v0  ;;  %598 = vmatpush3.msra.mxu1 %v234_v20  ;;  %v224_v30 = vld [vmem:[#allocation5 + $0x18] sm:$0xff]  ;;  %v223_v31 = vld [vmem:[#allocation5 + $0x10] sm:$0xff]  ;;  %v222_v32 = vld [vmem:[#allocation5 + $0x8] sm:$0xff] }
  0x31   :  { %567 = vmatpush3.msra.mxu0 %v98_v5  ;;  %599 = vmatprep.subr.mxu1 %v810_v0  ;;  %v221_v33 = vld [vmem:[#allocation5] sm:$0xff]  ;;  %v370_v2 = vld [vmem:[#allocation7 + $0x78] sm:$0xff]  ;;  %v369_v3 = vld [vmem:[#allocation7 + $0x70] sm:$0xff] }
  0x32   :  { %568 = vmatprep.subr.mxu0 %v810_v0  ;;  %600 = vmatpush3.msra.mxu1 %v233_v21  ;;  %v500_v34 = vld [vmem:[%s999_s2] ss:$0 sm:$0xff]  ;;  %v368_v4 = vld [vmem:[#allocation7 + $0x68] sm:$0xff] }
  0x33   :  { %569 = vmatpush3.msra.mxu0 %v97_v6  ;;  %601 = vmatprep.subr.mxu1 %v810_v0  ;;  %v501_v59 = vld [vmem:[%s1000_s3] ss:$0 sm:$0xff]  ;;  %v366_v6 = vld [vmem:[#allocation7 + $0x58] sm:$0xff] }
  0x34   :  { %570 = vmatprep.subr.mxu0 %v810_v0  ;;  %602 = vmatpush3.msra.mxu1 %v232_v22  ;;  %v502_v62 = vld [vmem:[%s1001_s4] ss:$0 sm:$0xff] }
  0x35   :  { %571 = vmatpush3.msra.mxu0 %v96_v7  ;;  %603 = vmatprep.subr.mxu1 %v810_v0  ;;  %v367_v5 = vld [vmem:[#allocation7 + $0x60] sm:$0xff]  ;;  %v365_v7 = vld [vmem:[#allocation7 + $0x50] sm:$0xff] }
  0x36   :  { %572 = vmatprep.subr.mxu0 %v810_v0  ;;  %604 = vmatpush3.msra.mxu1 %v231_v23  ;;  %v503_v18 = vld [vmem:[%s1003_s6] ss:$0 sm:$0xff] }
  0x37   :  { %573 = vmatpush3.msra.mxu0 %v95_v8  ;;  %605 = vmatprep.subr.mxu1 %v810_v0  ;;  %v364_v8 = vld [vmem:[#allocation7 + $0x48] sm:$0xff] }
  0x38   :  { %574 = vmatprep.subr.mxu0 %v810_v0  ;;  %606 = vmatpush3.msra.mxu1 %v230_v24 }
  0x39   :  { %575 = vmatpush3.msra.mxu0 %v94_v9  ;;  %607 = vmatprep.subr.mxu1 %v810_v0  ;;  %v363_v9 = vld [vmem:[#allocation7 + $0x40] sm:$0xff] }
  0x3a   :  { %576 = vmatprep.subr.mxu0 %v810_v0  ;;  %608 = vmatpush3.msra.mxu1 %v229_v25 }
  0x3b   :  { %577 = vmatpush3.msra.mxu0 %v93_v10  ;;  %609 = vmatprep.subr.mxu1 %v810_v0  ;;  %v362_v10 = vld [vmem:[#allocation7 + $0x38] sm:$0xff] }
  0x3c   :  { %578 = vmatprep.subr.mxu0 %v810_v0  ;;  %610 = vmatpush3.msra.mxu1 %v228_v26 }
  0x3d   :  { %579 = vmatpush3.msra.mxu0 %v92_v11  ;;  %611 = vmatprep.subr.mxu1 %v810_v0  ;;  %v361_v11 = vld [vmem:[#allocation7 + $0x30] sm:$0xff] }
  0x3e   :  { %580 = vmatprep.subr.mxu0 %v810_v0  ;;  %612 = vmatpush3.msra.mxu1 %v227_v27 }
  0x3f   :  { %581 = vmatpush3.msra.mxu0 %v91_v12  ;;  %613 = vmatprep.subr.mxu1 %v810_v0  ;;  %v360_v12 = vld [vmem:[#allocation7 + $0x28] sm:$0xff] }
  0x40   :  { %582 = vmatprep.subr.mxu0 %v810_v0  ;;  %614 = vmatpush3.msra.mxu1 %v226_v28 }
  0x41   :  { %583 = vmatpush3.msra.mxu0 %v90_v13  ;;  %615 = vmatprep.subr.mxu1 %v810_v0  ;;  %v359_v13 = vld [vmem:[#allocation7 + $0x20] sm:$0xff] }
  0x42   :  { %584 = vmatprep.subr.mxu0 %v810_v0  ;;  %616 = vmatpush3.msra.mxu1 %v225_v29 }
  0x43   :  { %585 = vmatpush3.msra.mxu0 %v89_v14  ;;  %617 = vmatprep.subr.mxu1 %v810_v0  ;;  %v358_v14 = vld [vmem:[#allocation7 + $0x18] sm:$0xff] }
  0x44   :  { %586 = vmatprep.subr.mxu0 %v810_v0  ;;  %618 = vmatpush3.msra.mxu1 %v224_v30 }
  0x45   :  { %587 = vmatpush3.msra.mxu0 %v88_v15  ;;  %619 = vmatprep.subr.mxu1 %v810_v0  ;;  %v357_v15 = vld [vmem:[#allocation7 + $0x10] sm:$0xff] }
  0x46   :  { %588 = vmatprep.subr.mxu0 %v810_v0  ;;  %620 = vmatpush3.msra.mxu1 %v223_v31 }
  0x47   :  { %589 = vmatpush3.msra.mxu0 %v87_v16  ;;  %621 = vmatprep.subr.mxu1 %v810_v0  ;;  %v356_v16 = vld [vmem:[#allocation7 + $0x8] sm:$0xff] }
  0x48   :  { %591 = vmatmul.mubr.f32.vlgmr.msra.gmra.mxu0 %v86_v17  ;;  %628 = vmatprep.subr.mxu0 %v810_v0  ;;  %v355_v17 = vld [vmem:[#allocation7] sm:$0xff] }
  0x49   :  { %660 = vmatprep.mubr.msk.f32.mxu0 %vm811_vm0, %v810_v0  ;;  %622 = vmatpush3.msra.mxu1 %v222_v32 }
  0x4a   :  { %623 = vmatprep.subr.mxu1 %v810_v0  ;;  %629 = vmatpush3.msra.mxu0 %v370_v2 }
  0x4b   :  { %624 = vmatpush3.msra.mxu1 %v221_v33  ;;  %630 = vmatprep.subr.mxu0 %v810_v0 }
  0x4c   :  { %631 = vmatpush3.msra.mxu0 %v369_v3 }
  0x4d   :  { %632 = vmatprep.subr.mxu0 %v810_v0 }
  0x4e   :  { %633 = vmatpush3.msra.mxu0 %v368_v4 }
  0x4f   :  { %634 = vmatprep.subr.mxu0 %v810_v0 }
  0x50   :  { %635 = vmatpush3.msra.mxu0 %v367_v5 }
  0x51   :  { %636 = vmatprep.subr.mxu0 %v810_v0 }
  0x52   :  { %637 = vmatpush3.msra.mxu0 %v366_v6 }
  0x53   :  { %638 = vmatprep.subr.mxu0 %v810_v0 }
  0x54   :  { %639 = vmatpush3.msra.mxu0 %v365_v7 }
  0x55   :  { %640 = vmatprep.subr.mxu0 %v810_v0 }
  0x56   :  { %641 = vmatpush3.msra.mxu0 %v364_v8 }
  0x57   :  { %642 = vmatprep.subr.mxu0 %v810_v0 }
  0x58   :  { %643 = vmatpush3.msra.mxu0 %v363_v9 }
  0x59   :  { %644 = vmatprep.subr.mxu0 %v810_v0 }
  0x5a   :  { %645 = vmatpush3.msra.mxu0 %v362_v10 }
  0x5b   :  { %646 = vmatprep.subr.mxu0 %v810_v0 }
  0x5c   :  { %647 = vmatpush3.msra.mxu0 %v361_v11 }
  0x5d   :  { %648 = vmatprep.subr.mxu0 %v810_v0 }
  0x5e   :  { %649 = vmatpush3.msra.mxu0 %v360_v12 }
  0x5f   :  { %650 = vmatprep.subr.mxu0 %v810_v0 }
  0x60   :  { %651 = vmatpush3.msra.mxu0 %v359_v13 }
  0x61   :  { %652 = vmatprep.subr.mxu0 %v810_v0 }
  0x62   :  { %653 = vmatpush3.msra.mxu0 %v358_v14 }
  0x63   :  { %654 = vmatprep.subr.mxu0 %v810_v0 }
  0x64   :  { %655 = vmatpush3.msra.mxu0 %v357_v15 }
  0x65   :  { %656 = vmatprep.subr.mxu0 %v810_v0 }
  0x66   :  { %657 = vmatpush3.msra.mxu0 %v356_v16 }
  0x67   :  { %658 = vmatprep.subr.mxu0 %v810_v0 }
  0x68   :  { %659 = vmatpush3.msra.mxu0 %v355_v17 }
 0x108   :  { %v176_v35 = vpop.f32.mrf.mxu0 }
 0x109   :  { %v177_v36 = vadd.f32 %v500_v34, %v176_v35 }
 0x10a   :  { %v592_v37 = vpop.f32.mrf.mxu0 }
 0x10b   :  { %180 = vst [vmem:[%s1008_s11] sm:$0xff] %v177_v36  ;;  %v181_v38 = vmax.f32 %v177_v36, 0.0 }
 0x10d   :  { %v182_v39 = vrot.slane %v181_v38, 4  ;;  %v189_v40 = vmul.f32 %v181_v38, %v181_v38 }
 0x10f   :  { %v183_v41 = vadd.f32 %v182_v39, %v181_v38  ;;  %v190_v42 = vrot.slane %v189_v40, 4 }
 0x111   :  { %v184_v43 = vrot.slane %v183_v41, 2  ;;  %v191_v44 = vadd.f32 %v190_v42, %v189_v40  ;;  %v504_v42 = vld [vmem:[%s1004_s7] ss:$0 sm:$0xff] }
 0x113   :  { %v185_v45 = vadd.f32 %v184_v43, %v183_v41  ;;  %v192_v46 = vrot.slane %v191_v44, 2 }
 0x115   :  { %v193_v47 = vadd.f32 %v192_v46, %v191_v44  ;;  %v186_v48 = vrot.slane %v185_v45, 1 }
 0x117   :  { %v194_v49 = vrot.slane %v193_v47, 1  ;;  %v187_v50 = vadd.f32 %v186_v48, %v185_v45  ;;  %v505_v45 = vld [vmem:[%s1005_s8] ss:$0 sm:$0xff] }
 0x119   :  { %v195_v51 = vadd.f32 %v194_v49, %v193_v47  ;;  %v188_v52 = vmul.f32 0.125, %v187_v50 }
 0x11b   :  { %v196_v53 = vmul.f32 0.125, %v195_v51  ;;  %v197_v54 = vmul.f32 %v188_v52, %v188_v52  ;;  %v203_v58 = vsub.f32 %v181_v38, %v188_v52 }
 0x11d   :  { %v198_v55 = vsub.f32 %v196_v53, %v197_v54  ;;  %v210_v60 = vmul.f32 %v501_v59, %v203_v58 }
 0x11f   :  { %v199_v56 = vmax.f32 %v198_v55, 0.0 }
 0x121   :  { %v200_v57 = vadd.f32 1e-05, %v199_v56 }
 0x123   :  { %673 = vrsqrt.f32 %v200_v57 }
 0x130   :  { %v674_v61 = vpop.eup %673 }
 0x131   :  { %v211_v63 = vmul.f32 %v674_v61, %v210_v60 }
 0x133   :  { %v219_v1 = vadd.f32 %v502_v62, %v211_v63 }
 0x135   :  { %626 = vmatmul.mubr.f32.vlgmr.msra.gmra.mxu1 %v219_v1  ;;  %220 = vst [vmem:[#allocation8] sm:$0xff] %v219_v1 }
 0x1f5   :  { %v310_v19 = vpop.f32.mrf.mxu1 }
 0x1f6   :  { %v311_v20 = vadd.f32 %v503_v18, %v310_v19 }
 0x1f7   :  { %v627_v21 = vpop.f32.mrf.mxu1 }
 0x1f8   :  { %314 = vst [vmem:[%s1009_s12] sm:$0xff] %v311_v20  ;;  %v315_v22 = vmax.f32 %v311_v20, 0.0 }
 0x1fa   :  { %v316_v23 = vrot.slane %v315_v22, 4  ;;  %v323_v24 = vmul.f32 %v315_v22, %v315_v22 }
 0x1fc   :  { %v317_v25 = vadd.f32 %v316_v23, %v315_v22  ;;  %v324_v26 = vrot.slane %v323_v24, 4 }
 0x1fe   :  { %v318_v27 = vrot.slane %v317_v25, 2  ;;  %v325_v28 = vadd.f32 %v324_v26, %v323_v24 }
 0x200   :  { %v319_v0 = vadd.f32 %v318_v27, %v317_v25  ;;  %v326_v29 = vrot.slane %v325_v28, 2 }
 0x202   :  { %v320_v30 = vrot.slane %v319_v0, 1  ;;  %v327_v31 = vadd.f32 %v326_v29, %v325_v28 }
 0x204   :  { %v321_v32 = vadd.f32 %v320_v30, %v319_v0  ;;  %v328_v33 = vrot.slane %v327_v31, 1 }
 0x206   :  { %v322_v34 = vmul.f32 0.125, %v321_v32  ;;  %v329_v35 = vadd.f32 %v328_v33, %v327_v31 }
 0x208   :  { %v330_v36 = vmul.f32 0.125, %v329_v35  ;;  %v331_v37 = vmul.f32 %v322_v34, %v322_v34  ;;  %v337_v41 = vsub.f32 %v315_v22, %v322_v34 }
 0x20a   :  { %v332_v38 = vsub.f32 %v330_v36, %v331_v37  ;;  %v344_v43 = vmul.f32 %v504_v42, %v337_v41 }
 0x20c   :  { %v333_v39 = vmax.f32 %v332_v38, 0.0 }
 0x20e   :  { %v334_v40 = vadd.f32 1e-05, %v333_v39 }
 0x210   :  { %675 = vrsqrt.f32 %v334_v40 }
 0x21d   :  { %v676_v44 = vpop.eup %675 }
 0x21e   :  { %v345_v46 = vmul.f32 %v676_v44, %v344_v43 }
 0x220   :  { %v353_v47 = vadd.f32 %v505_v45, %v345_v46 }
 0x222   :  { %661 = vmatmul.mubr.f32.vlgmr.msra.gmra.mxu0 %v353_v47  ;;  %354 = vst [vmem:[#allocation9] sm:$0xff] %v353_v47 }
 0x223   :  { %748 = shalt.err (!%p745_p5)
}
 0x224   :  { %472 = dma.vmem_to_hbm [thread:$0]  %s470_s29, 128, %s1011_s14, [#allocation10]  }
 0x225   :  { %s757_s8 = scalar_lea.vmem %s460_s16, 128  ;;  %p762_p7 = scmp.lt.s32.totalorder %s460_s16, %s460_s16 }
 0x226   :  { %p758_p6 = scmp.ne.s32.totalorder %s460_s16, %s757_s8  ;;  %p763_p8 = scmp.lt.s32.totalorder %s757_s8, %s757_s8 }
 0x228   :  { %p764_p9 = por %p763_p8, %p762_p7 }
 0x22a   :  { %p765_p10 = pnand %p764_p9, %p758_p6 }
 0x22c   :  { %768 = shalt.err (!%p765_p10)
}
 0x22d   :  { %462 = dma.vmem_to_hbm [thread:$0]  %s460_s16, 128, %s1010_s13, [#allocation4]   ;;  %v506_v48 = vld [vmem:[%s1007_s10] ss:$0 sm:$0xff] }
 0x22e   :  { %s814_s19 = smov [#allocation11]  }
 0x22f   :  { %s479_s20 = sshll.u32 %s814_s19, 4  ;;  %s480_s20 = int_to_ptr.vmem [resolvable:$true] %s479_s20 }
 0x230   :  { %s777_s14 = scalar_lea.vmem %s480_s20, 128  ;;  %p782_p12 = scmp.lt.s32.totalorder %s480_s20, %s480_s20 }
 0x231   :  { %p778_p11 = scmp.ne.s32.totalorder %s480_s20, %s777_s14  ;;  %p783_p13 = scmp.lt.s32.totalorder %s777_s14, %s777_s14 }
 0x233   :  { %p784_p0 = por %p783_p13, %p782_p12 }
 0x235   :  { %p785_p1 = pnand %p784_p0, %p778_p11 }
 0x2e2   :  { %v444_v49 = vpop.f32.mrf.mxu0 }
 0x2e3   :  { %v445_v50 = vadd.f32 %v506_v48, %v444_v49 }
 0x2e4   :  { %v662_v51 = vpop.f32.mrf.mxu0 }
 0x2e5   :  { %448 = vst [vmem:[#allocation11] sm:$0xff] %v445_v50 }
 0x2e6   :  { %788 = shalt.err (!%p785_p1)
}
 0x2e7   :  { %482 = dma.vmem_to_hbm [thread:$0]  %s480_s20, 128, %s1012_s15, [#allocation10]  }
 0x2e8   :  { %801 = dma.done.wait [#allocation4], 128  }
 0x2e9   :  { %802 = vsyncadd [#allocation4], 4294967168 }
 0x2ea   :  { %803 = dma.done.wait [#allocation10], 256  }
 0x2eb   :  { %804 = vsyncadd [#allocation10], 4294967040 }
 0x2ec   :  { %496 = vsyncpa [#allocation3], 1 }
 0x2ed   :  { %497 = vsyncpa [#allocation6], 1 }
 0x2ee   :  { %498 = vsyncpa [#allocation4], 1 }
 0x2ef   :  { %499 = vsyncpa [#allocation10], 1 }

</bundles_post_ra>
